<compile_context>
chip_gen: v7x
topology: tpu7x:2x2x1
jax: 0.10.0
libtpu: 0.0.40
codegen_flags: <defaults>
</compile_context>

<pallas_src>
import functools

import jax
import jax.numpy as jnp
from jax.experimental import pallas as pl
from jax.experimental.pallas import tpu as pltpu


def _leaky_relu(x, slope=0.01):
    return jnp.where(x > 0, x, slope * x)


def _round_up(x, m):
    return ((x + m - 1) // m) * m


def critic_ppo_kernel(
    state_ref,   # (TB, S)   VMEM  batch tile (streamed, pipelined)
    savg_ref,    # (1, S)    VMEM  resident
    sinv_ref,    # (1, S)    VMEM  resident (1 / state_std, precomputed)
    w1_ref,      # (D1, S)   VMEM  resident (PyTorch-native (out, in) layout)
    b1_ref,      # (D1, 1)   VMEM  resident
    w2_ref,      # (D2, D1)  VMEM  resident
    b2_ref,      # (D2, 1)   VMEM  resident
    w3_ref,      # (D2, 1)   VMEM  resident (final-layer weight as a column)
    affine_ref,  # (1, 2)    SMEM  [value_std, b3*value_std + value_avg]
    out_ref,     # (1, TB)   VMEM  lane-dense value row for this batch tile
):
    # --- state normalization in batch-major layout (broadcast (1,S) rows) ---
    x = (state_ref[...] - savg_ref[...]) * sinv_ref[...]            # (TB, S)

    # --- switch to feature-major: batch lives on the lane axis from here on ---
    xt = x.T                                                        # (S, TB)

    # hidden layer 1 + LeakyReLU (MXU, f32 accumulation)
    h = jnp.dot(w1_ref[...], xt, preferred_element_type=jnp.float32) + b1_ref[...]
    h = _leaky_relu(h)                                              # (D1, TB)

    # hidden layer 2 + LeakyReLU
    h = jnp.dot(w2_ref[...], h, preferred_element_type=jnp.float32) + b2_ref[...]
    h = _leaky_relu(h)                                              # (D2, TB)

    # output head: VPU multiply + sublane reduce (keeps the N=1 matmul off the MXU)
    v = jnp.sum(h * w3_ref[...], axis=0, keepdims=True)             # (1, TB)

    # folded bias + value re-normalization: (v_raw + b3) * value_std + value_avg
    v_scale = affine_ref[0, 0]
    v_shift = affine_ref[0, 1]
    out_ref[...] = v * v_scale + v_shift


@functools.partial(jax.jit, static_argnames=("tile_batch",))
def critic_ppo_forward(state, params, *, tile_batch=2048):
    """CriticPPO forward. state: (B, S) f32 -> (B,) f32 values."""
    B, S = state.shape
    w1, b1 = params["w1"], params["b1"]          # (D1, S), (D1, 1)
    w2, b2 = params["w2"], params["b2"]          # (D2, D1), (D2, 1)
    w3 = params["w3"]                            # (D2, 1)
    D1, D2 = w1.shape[0], w2.shape[0]

    # Batch tile: multiple of 128 (lane-dense output row), capped by padded batch.
    tile_batch = max(128, _round_up(tile_batch, 128))
    TB = min(tile_batch, _round_up(B, 128))
    B_pad = _round_up(B, TB)
    if B_pad != B:
        state = jnp.pad(state, ((0, B_pad - B), (0, 0)))
    grid = (B_pad // TB,)

    # One-time per call (outside the grid loop): reciprocal std + folded head affine.
    sinv = 1.0 / params["state_std"]                                # (1, S)
    v_std, v_avg, b3 = params["value_std"], params["value_avg"], params["b3"]
    affine = jnp.stack([v_std, b3 * v_std + v_avg]).reshape(1, 2).astype(jnp.float32)

    def _resident(shape):
        # Full-array block with a constant index_map -> stays in VMEM across steps.
        return pl.BlockSpec(shape, lambda i: (0, 0))

    out2d = pl.pallas_call(
        critic_ppo_kernel,
        out_shape=jax.ShapeDtypeStruct((1, B_pad), jnp.float32),
        grid=grid,
        in_specs=[
            pl.BlockSpec((TB, S), lambda i: (i, 0)),                # state tile
            _resident((1, S)),                                      # state_avg
            _resident((1, S)),                                      # 1/state_std
            _resident((D1, S)),                                     # w1
            _resident((D1, 1)),                                     # b1
            _resident((D2, D1)),                                    # w2
            _resident((D2, 1)),                                     # b2
            _resident((D2, 1)),                                     # w3
            pl.BlockSpec(memory_space=pltpu.MemorySpace.SMEM),      # folded scalars
        ],
        out_specs=pl.BlockSpec((1, TB), lambda i: (0, i)),          # lane-dense row
        compiler_params=pltpu.CompilerParams(
            dimension_semantics=("parallel",)),
    )(state, params["state_avg"], sinv, w1, b1, w2, b2, w3, affine)

    # squeeze(1) + drop batch padding — glue outside the kernel
    return out2d[0, :B]


def init_params(key, state_dim, dims):
    """Synthetic params mirroring CriticPPO's shapes/init.

    Weights are stored in PyTorch-native (out_features, in_features) layout and
    biases as (out_features, 1) columns.  Only the 2-hidden-layer case
    (dims = [d0, d1]) used by the demo is materialized.
    Hidden layers: uniform(-1/sqrt(fan_in), 1/sqrt(fan_in)); final layer:
    orthogonal init with std=0.5 and bias 1e-6 (layer_init_with_orthogonal).
    """
    d0, d1 = dims
    k1, k2, k3, kb1, kb2, ka, ks = jax.random.split(key, 7)

    def uniform_linear(kw, kb, fan_in, fan_out):
        bound = 1.0 / jnp.sqrt(jnp.float32(fan_in))
        w = jax.random.uniform(kw, (fan_out, fan_in), jnp.float32, -bound, bound)
        b = jax.random.uniform(kb, (fan_out, 1), jnp.float32, -bound, bound)
        return w, b

    w1, b1 = uniform_linear(k1, kb1, state_dim, d0)
    w2, b2 = uniform_linear(k2, kb2, d0, d1)

    a = jax.random.normal(k3, (d1, 1), jnp.float32)
    q, _ = jnp.linalg.qr(a)                      # unit-norm column
    w3 = 0.5 * q                                 # stored as (d1, 1)
    b3 = jnp.float32(1e-6)

    return {
        # running-stat buffers (non-trivial so normalization paths are exercised)
        "state_avg": 0.1 * jax.random.normal(ka, (1, state_dim), jnp.float32),
        "state_std": 1.0 + 0.2 * jax.random.uniform(ks, (1, state_dim), jnp.float32),
        "value_avg": jnp.float32(0.25),
        "value_std": jnp.float32(1.5),
        "w1": w1, "b1": b1,
        "w2": w2, "b2": b2,
        "w3": w3, "b3": b3,
    }


def reference_forward(state, params):
    """Pure-JAX reference (module semantics, unfused) for correctness checking."""
    x = (state - params["state_avg"]) / params["state_std"]
    h = x @ params["w1"].T + params["b1"][:, 0]
    h = jnp.where(h > 0, h, 0.01 * h)
    h = h @ params["w2"].T + params["b2"][:, 0]
    h = jnp.where(h > 0, h, 0.01 * h)
    v = h @ params["w3"] + params["b3"]
    v = v * params["value_std"] + params["value_avg"]
    return v[:, 0]


if __name__ == "__main__":
    key = jax.random.PRNGKey(0)
    k_param, k_state = jax.random.split(key)

    batch = 300            # not a tile multiple -> exercises padding + unpadding
    state_dim = 16
    dims = [32, 32]        # hidden dims of the critic MLP

    params = init_params(k_param, state_dim, dims)
    state = jax.random.normal(k_state, (batch, state_dim), jnp.float32)

    # Small tile so the demo runs a real multi-step (parallel) grid; production
    # callers should keep the default tile_batch=2048 to amortize per-step overhead.
    out = critic_ppo_forward(state, params, tile_batch=128)
    out = jax.block_until_ready(out)

    ref = reference_forward(state, params)
    assert out.shape == (batch,), f"bad output shape {out.shape}"
    max_err = jnp.max(jnp.abs(out - ref))
    assert jnp.allclose(out, ref, atol=1e-4, rtol=1e-4), f"mismatch vs reference (max abs err {max_err})"

    print("KERNEL_OK")
</pallas_src>

<mosaic_0001>
module attributes {stable_mosaic.version = 11 : i64} {
  func.func @critic_ppo_kernel(%arg0: i32, %arg1: memref<128x16xf32, #tpu.memory_space<vmem>>, %arg2: memref<1x16xf32, #tpu.memory_space<vmem>>, %arg3: memref<1x16xf32, #tpu.memory_space<vmem>>, %arg4: memref<32x16xf32, #tpu.memory_space<vmem>>, %arg5: memref<32x1xf32, #tpu.memory_space<vmem>>, %arg6: memref<32x32xf32, #tpu.memory_space<vmem>>, %arg7: memref<32x1xf32, #tpu.memory_space<vmem>>, %arg8: memref<32x1xf32, #tpu.memory_space<vmem>>, %arg9: memref<1x2xf32, #tpu.memory_space<smem>>, %arg10: memref<1x128xf32, #tpu.memory_space<vmem>>) attributes {dimension_semantics = [#tpu.dimension_semantics<parallel>], iteration_bounds = array<i64: 3>, scalar_prefetch = 0 : i64, scratch_operands = 0 : i64, tpu.core_type = #tpu.core_type<tc>, window_params = [{transform_indices = @transform_0, window_bounds = array<i64: 128, 16>}, {pipeline_mode = #tpu.pipeline_mode<synchronous>, transform_indices = @transform_1, window_bounds = array<i64: 1, 16>}, {pipeline_mode = #tpu.pipeline_mode<synchronous>, transform_indices = @transform_2, window_bounds = array<i64: 1, 16>}, {pipeline_mode = #tpu.pipeline_mode<synchronous>, transform_indices = @transform_3, window_bounds = array<i64: 32, 16>}, {pipeline_mode = #tpu.pipeline_mode<synchronous>, transform_indices = @transform_4, window_bounds = array<i64: 32, 1>}, {pipeline_mode = #tpu.pipeline_mode<synchronous>, transform_indices = @transform_5, window_bounds = array<i64: 32, 32>}, {pipeline_mode = #tpu.pipeline_mode<synchronous>, transform_indices = @transform_6, window_bounds = array<i64: 32, 1>}, {pipeline_mode = #tpu.pipeline_mode<synchronous>, transform_indices = @transform_7, window_bounds = array<i64: 32, 1>}, {transform_indices = @transform_8, window_bounds = array<i64: 1, 2>}, {transform_indices = @transform_9, window_bounds = array<i64: 1, 128>}]} {
    %c0 = arith.constant 0 : index
    %c0_0 = arith.constant 0 : index
    %0 = vector.load %arg1[%c0, %c0_0] : memref<128x16xf32, #tpu.memory_space<vmem>>, vector<128x16xf32>
    %c0_1 = arith.constant 0 : index
    %c0_2 = arith.constant 0 : index
    %1 = vector.load %arg2[%c0_1, %c0_2] : memref<1x16xf32, #tpu.memory_space<vmem>>, vector<1x16xf32>
    %2 = vector.broadcast %1 : vector<1x16xf32> to vector<128x16xf32>
    %3 = arith.subf %0, %2 : vector<128x16xf32>
    %c0_3 = arith.constant 0 : index
    %c0_4 = arith.constant 0 : index
    %4 = vector.load %arg3[%c0_3, %c0_4] : memref<1x16xf32, #tpu.memory_space<vmem>>, vector<1x16xf32>
    %5 = vector.broadcast %4 : vector<1x16xf32> to vector<128x16xf32>
    %6 = arith.mulf %3, %5 : vector<128x16xf32>
    %7 = tpu.transpose %6, [1, 0] : vector<128x16xf32> -> vector<16x128xf32>
    %c0_5 = arith.constant 0 : index
    %c0_6 = arith.constant 0 : index
    %8 = vector.load %arg4[%c0_5, %c0_6] : memref<32x16xf32, #tpu.memory_space<vmem>>, vector<32x16xf32>
    %cst = arith.constant dense<0.000000e+00> : vector<32x128xf32>
    %9 = tpu.matmul %8, %7, %cst {dimension_numbers = #tpu.dot_dimension_numbers<[1], [0], [0], [1], [0, 0, 1, 1], [], []>} : vector<32x16xf32>, vector<16x128xf32>, vector<32x128xf32> -> vector<32x128xf32>
    %c0_7 = arith.constant 0 : index
    %c0_8 = arith.constant 0 : index
    %10 = vector.load %arg5[%c0_7, %c0_8] : memref<32x1xf32, #tpu.memory_space<vmem>>, vector<32x1xf32>
    %11 = vector.broadcast %10 : vector<32x1xf32> to vector<32x128xf32>
    %12 = arith.addf %9, %11 : vector<32x128xf32>
    %cst_9 = arith.constant 0.000000e+00 : f32
    %13 = vector.broadcast %cst_9 : f32 to vector<32x128xf32>
    %14 = arith.cmpf ogt, %12, %13 : vector<32x128xf32>
    %cst_10 = arith.constant 0.00999999977 : f32
    %15 = vector.broadcast %cst_10 : f32 to vector<32x128xf32>
    %16 = arith.mulf %15, %12 : vector<32x128xf32>
    %17 = arith.select %14, %12, %16 : vector<32x128xi1>, vector<32x128xf32>
    %c0_11 = arith.constant 0 : index
    %c0_12 = arith.constant 0 : index
    %18 = vector.load %arg6[%c0_11, %c0_12] : memref<32x32xf32, #tpu.memory_space<vmem>>, vector<32x32xf32>
    %cst_13 = arith.constant dense<0.000000e+00> : vector<32x128xf32>
    %19 = tpu.matmul %18, %17, %cst_13 {dimension_numbers = #tpu.dot_dimension_numbers<[1], [0], [0], [1], [0, 0, 1, 1], [], []>} : vector<32x32xf32>, vector<32x128xf32>, vector<32x128xf32> -> vector<32x128xf32>
    %c0_14 = arith.constant 0 : index
    %c0_15 = arith.constant 0 : index
    %20 = vector.load %arg7[%c0_14, %c0_15] : memref<32x1xf32, #tpu.memory_space<vmem>>, vector<32x1xf32>
    %21 = vector.broadcast %20 : vector<32x1xf32> to vector<32x128xf32>
    %22 = arith.addf %19, %21 : vector<32x128xf32>
    %cst_16 = arith.constant 0.000000e+00 : f32
    %23 = vector.broadcast %cst_16 : f32 to vector<32x128xf32>
    %24 = arith.cmpf ogt, %22, %23 : vector<32x128xf32>
    %cst_17 = arith.constant 0.00999999977 : f32
    %25 = vector.broadcast %cst_17 : f32 to vector<32x128xf32>
    %26 = arith.mulf %25, %22 : vector<32x128xf32>
    %27 = arith.select %24, %22, %26 : vector<32x128xi1>, vector<32x128xf32>
    %c0_18 = arith.constant 0 : index
    %c0_19 = arith.constant 0 : index
    %28 = vector.load %arg8[%c0_18, %c0_19] : memref<32x1xf32, #tpu.memory_space<vmem>>, vector<32x1xf32>
    %29 = vector.broadcast %28 : vector<32x1xf32> to vector<32x128xf32>
    %30 = arith.mulf %27, %29 : vector<32x128xf32>
    %cst_20 = arith.constant dense<0.000000e+00> : vector<128xf32>
    %31 = vector.multi_reduction <add>, %30, %cst_20 [0] : vector<32x128xf32> to vector<128xf32>
    %32 = vector.shape_cast %31 : vector<128xf32> to vector<1x128xf32>
    %c0_21 = arith.constant 0 : index
    %c0_22 = arith.constant 0 : index
    %33 = memref.load %arg9[%c0_21, %c0_22] : memref<1x2xf32, #tpu.memory_space<smem>>
    %c0_23 = arith.constant 0 : index
    %c1 = arith.constant 1 : index
    %34 = memref.load %arg9[%c0_23, %c1] : memref<1x2xf32, #tpu.memory_space<smem>>
    %35 = vector.broadcast %33 : f32 to vector<1x128xf32>
    %36 = arith.mulf %32, %35 : vector<1x128xf32>
    %37 = vector.broadcast %34 : f32 to vector<1x128xf32>
    %38 = arith.addf %36, %37 : vector<1x128xf32>
    %c0_24 = arith.constant 0 : index
    %c0_25 = arith.constant 0 : index
    %39 = vector.load %arg10[%c0_24, %c0_25] : memref<1x128xf32, #tpu.memory_space<vmem>>, vector<1x128xf32>
    tpu.vector_store %arg10[%c0_24, %c0_25], %38 {strides = array<i32>} : memref<1x128xf32, #tpu.memory_space<vmem>>, vector<1x128xf32>,
    return
  }
  func.func @transform_0(%arg0: i32) -> (i32, i32) {
    %c0_i32 = arith.constant 0 : i32
    %c0_i32_0 = arith.constant 0 : i32
    return %arg0, %c0_i32 : i32, i32
  }
  func.func @transform_1(%arg0: i32) -> (i32, i32) {
    %c0_i32 = arith.constant 0 : i32
    %c0_i32_0 = arith.constant 0 : i32
    %c0_i32_1 = arith.constant 0 : i32
    return %c0_i32, %c0_i32_0 : i32, i32
  }
  func.func @transform_2(%arg0: i32) -> (i32, i32) {
    %c0_i32 = arith.constant 0 : i32
    %c0_i32_0 = arith.constant 0 : i32
    %c0_i32_1 = arith.constant 0 : i32
    return %c0_i32, %c0_i32_0 : i32, i32
  }
  func.func @transform_3(%arg0: i32) -> (i32, i32) {
    %c0_i32 = arith.constant 0 : i32
    %c0_i32_0 = arith.constant 0 : i32
    %c0_i32_1 = arith.constant 0 : i32
    return %c0_i32, %c0_i32_0 : i32, i32
  }
  func.func @transform_4(%arg0: i32) -> (i32, i32) {
    %c0_i32 = arith.constant 0 : i32
    %c0_i32_0 = arith.constant 0 : i32
    %c0_i32_1 = arith.constant 0 : i32
    return %c0_i32, %c0_i32_0 : i32, i32
  }
  func.func @transform_5(%arg0: i32) -> (i32, i32) {
    %c0_i32 = arith.constant 0 : i32
    %c0_i32_0 = arith.constant 0 : i32
    %c0_i32_1 = arith.constant 0 : i32
    return %c0_i32, %c0_i32_0 : i32, i32
  }
  func.func @transform_6(%arg0: i32) -> (i32, i32) {
    %c0_i32 = arith.constant 0 : i32
    %c0_i32_0 = arith.constant 0 : i32
    %c0_i32_1 = arith.constant 0 : i32
    return %c0_i32, %c0_i32_0 : i32, i32
  }
  func.func @transform_7(%arg0: i32) -> (i32, i32) {
    %c0_i32 = arith.constant 0 : i32
    %c0_i32_0 = arith.constant 0 : i32
    %c0_i32_1 = arith.constant 0 : i32
    return %c0_i32, %c0_i32_0 : i32, i32
  }
  func.func @transform_8(%arg0: i32) -> (i32, i32) {
    %c0_i32 = arith.constant 0 : i32
    %c0_i32_0 = arith.constant 0 : i32
    %c0_i32_1 = arith.constant 0 : i32
    return %c0_i32, %c0_i32_0 : i32, i32
  }
  func.func @transform_9(%arg0: i32) -> (i32, i32) {
    %c0_i32 = arith.constant 0 : i32
    %c0_i32_0 = arith.constant 0 : i32
    return %c0_i32, %arg0 : i32, i32
  }
}

</mosaic_0001>

<bundles_post_ra>
// kernel: critic_ppo_forward.1
= control target key start
LH: loop header
LB: loop body
LE: loop exit
PB: predicated region body
PF: predicated region fallthrough
CT: control target
= control target key end

     0   :  { %14 = vsyncpa [#allocation3], 0  ;;  %s1109_s30 = smov 0   ;;  %s1315_s0 = inlined_call_operand.vmem [shape: f32[384,16], index: 0, kind: input, shape index: {}]   ;;  %s1316_s1 = inlined_call_operand.vmem [shape: f32[1,16], index: 1, kind: input, shape index: {}]   ;;  %s1317_s2 = inlined_call_operand.vmem [shape: f32[1,16], index: 2, kind: input, shape index: {}]   ;;  %s1318_s3 = inlined_call_operand.vmem [shape: f32[32,16], index: 3, kind: input, shape index: {}]   ;;  %s1319_s4 = inlined_call_operand.vmem [shape: f32[32,1], index: 4, kind: input, shape index: {}]   ;;  %s1320_s5 = inlined_call_operand.vmem [shape: f32[32,32], index: 5, kind: input, shape index: {}]   ;;  %s1321_s6 = inlined_call_operand.vmem [shape: f32[32,1], index: 6, kind: input, shape index: {}]   ;;  %s1322_s7 = inlined_call_operand.vmem [shape: f32[32,1], index: 7, kind: input, shape index: {}]   ;;  %s1323_s8 = inlined_call_operand.vmem [shape: f32[1,2], index: 8, kind: input, shape index: {}]   ;;  %s1324_s9 = inlined_call_operand.vmem [shape: f32[1,384], index: 9, kind: output, shape index: {}]  }
   0x1 LB: > { %s1115_s10 = sadd.s32 4294967295, %s1055_s30   ;;  %p836_p0 = scmp.ge.s32.totalorder %s1055_s30, 1  ;;  %s1055_s30 = sphi %s1109_s30, %s20_s30  }
   0x2   : > { %p245_p1 = scmp.lt.s32.totalorder %s1055_s30, 4  ;;  %s279_s13 = sshll.u32 %s1323_s8, 4  ;;  %s280_s13 = int_to_ptr.vmem [resolvable:$true] %s279_s13 }
   0x3   : > { %p1016_p3 = scmp.eq.s32.totalorder %s1115_s10, 0  ;;  %s1030_s15 = scalar_lea.vmem %s280_s13, 16 }
   0x4   : > { %p1122_p2 = pnand %p836_p0, %p245_p1  ;;  %p1031_p6 = scmp.ne.s32.totalorder %s280_s13, %s1030_s15 }
   0x5   : > { %p1038_p10 = scmp.lt.s32.totalorder %s280_s13, %s280_s13  ;;  %p1039_p11 = scmp.lt.s32.totalorder %s1030_s15, %s1030_s15 }
   0x6   : > { %p1012_p4 = pneg %p1122_p2 }
   0x7   : > { %p1040_p12 = por %p1039_p11, %p1038_p10 }
   0x8   : > { %p1013_p5 = pnand %p1016_p3, %p1012_p4 }
   0xa   : > { %p1032_p7 = pneg %p1013_p5 }
   0xc   : > { %p1033_p8 = pnand %p1032_p7, %p1031_p6 }
   0xe   : > { %p1034_p9 = pneg %p1033_p8 }
  0x10   : > { %p1041_p13 = pnand %p1040_p12, %p1034_p9 }
  0x12   : > { %1044 = shalt.err (!%p1041_p13)
}
  0x13   : > { %s1057_s16 = smov [#allocation2]   ;;  %301 = sbr.rel (%p1122_p2) target bundleno = 579 (0x243), region = 56 }
  0x14   : > { %1015 = dma.vmem_to_smem (!%p1013_p5), %s280_s13, 16, %s1057_s16, [#allocation3]  }
  0x1a   : > { %1050 = dma.done.wait (%p1016_p3), [#allocation3], 16  }
  0x1b   : > { %1052 = vsyncadd (%p1016_p3), [#allocation3], 4294967280 }
  0x1c   : > { %307 = sfence }
  0x1d   : > { %s841_s17 = sshll.u32 %s1115_s10, 4  ;;  %vm435_vm0 = vcmask 130048   ;;  %v407_v0 = vld [vmem:[%s1318_s3] sm:$0xff]  ;;  %v1058_v1 = vmov 0   ;;  %v413_v3 = vld [vmem:[%s1319_s4 + $0x10] sm:$0xff]  ;;  %v412_v4 = vld [vmem:[%s1319_s4 + $0x8] sm:$0xff] }
  0x1e   : > { %p337_p0 = scmp.lt.s32.totalorder %s841_s17, 47  ;;  %932 = vmatprep.mubr.msk.f32.mxu0 %vm435_vm0, %v407_v0  ;;  %1028 = vset.pattern.permute.xlu0 %v1058_v1  ;;  %v411_v2 = vld [vmem:[%s1319_s4] sm:$0xff]  ;;  %v414_v6 = vld [vmem:[%s1319_s4 + $0x18] sm:$0xff]  ;;  %v598_v19 = vld [vmem:[%s1321_s6 + $0x8] sm:$0xff]  ;;  %vm621_vm2 = vcmask 261120   ;;  %s768_s28 = sld [smem:[#allocation2]] }
  0x1f   : > { %417 = vperm.xlu0 %1028, %v411_v2   ;;  %1029 = vset.pattern.permute.xlu1 %v1058_v1  ;;  %v1154_v5 = vld [vmem:[%s1316_s1] ss:$0 sm:$0xff]  ;;  %vm1190_vm1 = vmpackc.low %vm435_vm0, %vm435_vm0  ;;  %v599_v29 = vld [vmem:[%s1321_s6 + $0x10] sm:$0xff]  ;;  %s869_s29 = sld [smem:[#allocation2 + $0x1]]  ;;  %p342_p1 = scmp.lt.s32.totalorder %s1115_s10, 2 }
  0x20   : > { %s1329_s17 = smov (!%p337_p0, %s841_s17), 47  ;;  %427 = vperm.xlu1 %1029, %v413_v3   ;;  %v1167_v7 = vld [vmem:[%s1317_s2] ss:$0 sm:$0xff]  ;;  %v600_v30 = vld [vmem:[%s1321_s6 + $0x18] sm:$0xff]  ;;  %v732_v36 = vld [vmem:[%s1322_s7 + $0x8] sm:$0xff] }
  0x21   : > { %s842_s26 = sshll.u32 %s1329_s17, 3  ;;  %v597_v15 = vld [vmem:[%s1321_s6] sm:$0xff]  ;;  %v733_v40 = vld [vmem:[%s1322_s7 + $0x10] sm:$0xff]  ;;  %v734_v41 = vld [vmem:[%s1322_s7 + $0x18] sm:$0xff]  ;;  %s1331_s10 = smov (!%p342_p1, %s1115_s10), 2 }
  0x22   : > { %s1162_s14 = scalar_lea.vmem %s1315_s0, %s842_s26  ;;  %v731_v35 = vld [vmem:[%s1322_s7] sm:$0xff]  ;;  %s344_s13 = scalar_lea.vmem %s1324_s9, %s1331_s10 }
  0x23   : > { %v345_v8 = vld [vmem:[%s1162_s14] sm:$0xff]  ;;  %v346_v9 = vld [vmem:[%s1162_s14 + $0x8] sm:$0xff]  ;;  %v347_v10 = vld [vmem:[%s1162_s14 + $0x10] sm:$0xff]  ;;  %422 = vperm.xlu0 %1028, %v412_v4  }
  0x24   : > { %v368_v11 = vsub.f32 %v345_v8, %v1154_v5  ;;  %v369_v12 = vsub.f32 %v346_v9, %v1154_v5  ;;  %v348_v13 = vld [vmem:[%s1162_s14 + $0x18] sm:$0xff]  ;;  %v370_v14 = vsub.f32 %v347_v10, %v1154_v5  ;;  %432 = vperm.xlu1 %1029, %v414_v6   ;;  %v349_v17 = vld [vmem:[%s1162_s14 + $0x20] sm:$0xff]  ;;  %v350_v18 = vld [vmem:[%s1162_s14 + $0x28] sm:$0xff] }
  0x25   : > { %v371_v16 = vsub.f32 %v348_v13, %v1154_v5  ;;  %v372_v26 = vsub.f32 %v349_v17, %v1154_v5  ;;  %v373_v27 = vsub.f32 %v350_v18, %v1154_v5  ;;  %v351_v33 = vld [vmem:[%s1162_s14 + $0x30] sm:$0xff]  ;;  %v352_v34 = vld [vmem:[%s1162_s14 + $0x38] sm:$0xff]  ;;  %v353_v44 = vld [vmem:[%s1162_s14 + $0x40] sm:$0xff] }
  0x26   : > { %v391_v20 = vmul.f32 %v1167_v7, %v368_v11  ;;  %v392_v21 = vmul.f32 %v1167_v7, %v369_v12  ;;  %v393_v22 = vmul.f32 %v1167_v7, %v370_v14  ;;  %v374_v38 = vsub.f32 %v351_v33, %v1154_v5  ;;  %v354_v45 = vld [vmem:[%s1162_s14 + $0x48] sm:$0xff]  ;;  %v355_v51 = vld [vmem:[%s1162_s14 + $0x50] sm:$0xff]  ;;  %v356_v52 = vld [vmem:[%s1162_s14 + $0x58] sm:$0xff] }
  0x27   : > { %v394_v24 = vmul.f32 %v1167_v7, %v371_v16  ;;  %603 = vperm.xlu0 %1028, %v597_v15   ;;  %v395_v31 = vmul.f32 %v1167_v7, %v372_v26  ;;  %v396_v32 = vmul.f32 %v1167_v7, %v373_v27  ;;  %v375_v39 = vsub.f32 %v352_v34, %v1154_v5  ;;  %v357_v58 = vld [vmem:[%s1162_s14 + $0x60] sm:$0xff]  ;;  %v358_v59 = vld [vmem:[%s1162_s14 + $0x68] sm:$0xff]  ;;  %v359_v1 = vld [vmem:[%s1162_s14 + $0x70] sm:$0xff] }
  0x28   : > { %v952_v25 = vpack.c.bf16 %v392_v21, %v391_v20  ;;  %608 = vperm.xlu1 %1029, %v598_v19   ;;  %v397_v42 = vmul.f32 %v1167_v7, %v374_v38  ;;  %v376_v47 = vsub.f32 %v353_v44, %v1154_v5  ;;  %v377_v48 = vsub.f32 %v354_v45, %v1154_v5  ;;  %v360_v2 = vld [vmem:[%s1162_s14 + $0x78] sm:$0xff]  ;;  %v409_v11 = vld [vmem:[%s1318_s3 + $0x10] sm:$0xff]  ;;  %v593_v12 = vld [vmem:[%s1320_s5] sm:$0xff] }
  0x29   : > { %v958_v28 = vpack.c.bf16 %v394_v24, %v393_v22  ;;  %v964_v37 = vpack.c.bf16 %v396_v32, %v395_v31  ;;  %v398_v43 = vmul.f32 %v1167_v7, %v375_v39  ;;  %v378_v54 = vsub.f32 %v355_v51, %v1154_v5  ;;  %946 = vmatprep.mubr.msk.f32.mxu1 %vm621_vm2, %v593_v12 }
  0x2a   : > { %954 = vmatprep.subr.msk.bf16.mxu0 %vm1190_vm1, %v952_v25  ;;  %v399_v49 = vmul.f32 %v1167_v7, %v376_v47  ;;  %v400_v50 = vmul.f32 %v1167_v7, %v377_v48  ;;  %v379_v55 = vsub.f32 %v356_v52, %v1154_v5  ;;  %v380_v61 = vsub.f32 %v357_v58, %v1154_v5 }
  0x2b   : > { %957 = vmatpush3.bf16.xpose.msk.msra.mxu0 %vm1190_vm1, %v952_v25  ;;  %613 = vperm.xlu0 %1028, %v599_v29   ;;  %v970_v46 = vpack.c.bf16 %v398_v43, %v397_v42  ;;  %v401_v56 = vmul.f32 %v1167_v7, %v378_v54  ;;  %v381_v62 = vsub.f32 %v358_v59, %v1154_v5  ;;  %v772_v12 = vstv %s869_s29 }
  0x2c   : > { %960 = vmatprep.subr.msk.bf16.mxu0 %vm1190_vm1, %v958_v28  ;;  %618 = vperm.xlu1 %1029, %v600_v30   ;;  %v976_v53 = vpack.c.bf16 %v400_v50, %v399_v49  ;;  %v402_v57 = vmul.f32 %v1167_v7, %v379_v55  ;;  %v403_v63 = vmul.f32 %v1167_v7, %v380_v61 }
  0x2d   : > { %v404_v0 = vmul.f32 %v1167_v7, %v381_v62  ;;  %v382_v4 = vsub.f32 %v359_v1, %v1154_v5  ;;  %v383_v6 = vsub.f32 %v360_v2, %v1154_v5  ;;  %v408_v5 = vld [vmem:[%s1318_s3 + $0x8] sm:$0xff] }
  0x2e   : > { %v982_v60 = vpack.c.bf16 %v402_v57, %v401_v56 }
  0x2f   : > { %737 = vperm.xlu0 %1028, %v731_v35   ;;  %v988_v3 = vpack.c.bf16 %v404_v0, %v403_v63  ;;  %v405_v8 = vmul.f32 %v1167_v7, %v382_v4  ;;  %v406_v9 = vmul.f32 %v1167_v7, %v383_v6  ;;  %v410_v7 = vld [vmem:[%s1318_s3 + $0x18] sm:$0xff]  ;;  %v594_v35 = vld [vmem:[%s1320_s5 + $0x8] sm:$0xff] }
  0x30   : > { %742 = vperm.xlu1 %1029, %v732_v36   ;;  %v595_v36 = vld [vmem:[%s1320_s5 + $0x10] sm:$0xff] }
  0x31   : > { %v994_v10 = vpack.c.bf16 %v406_v9, %v405_v8 }
  0x33   : > { %963 = vmatpush3.bf16.xpose.msk.msra.mxu0 %vm1190_vm1, %v958_v28  ;;  %747 = vperm.xlu0 %1028, %v733_v40  }
  0x34   : > { %966 = vmatprep.subr.msk.bf16.mxu0 %vm1190_vm1, %v964_v37  ;;  %752 = vperm.xlu1 %1029, %v734_v41  }
  0x3b   : > { %969 = vmatpush3.bf16.xpose.msk.msra.mxu0 %vm1190_vm1, %v964_v37  ;;  %v596_v37 = vld [vmem:[%s1320_s5 + $0x18] sm:$0xff] }
  0x3c   : > { %972 = vmatprep.subr.msk.bf16.mxu0 %vm1190_vm1, %v970_v46 }
  0x43   : > { %975 = vmatpush3.bf16.xpose.msk.msra.mxu0 %vm1190_vm1, %v970_v46 }
  0x44   : > { %978 = vmatprep.subr.msk.bf16.mxu0 %vm1190_vm1, %v976_v53 }
  0x4b   : > { %981 = vmatpush3.bf16.xpose.msk.msra.mxu0 %vm1190_vm1, %v976_v53 }
  0x4c   : > { %984 = vmatprep.subr.msk.bf16.mxu0 %vm1190_vm1, %v982_v60 }
  0x53   : > { %987 = vmatpush3.bf16.xpose.msk.msra.mxu0 %vm1190_vm1, %v982_v60 }
  0x54   : > { %990 = vmatprep.subr.msk.bf16.mxu0 %vm1190_vm1, %v988_v3 }
  0x5b   : > { %993 = vmatpush3.bf16.xpose.msk.msra.mxu0 %vm1190_vm1, %v988_v3 }
  0x5c   : > { %996 = vmatprep.subr.msk.bf16.mxu0 %vm1190_vm1, %v994_v10 }
  0x63   : > { %999 = vmatpush3.bf16.xpose.msk.msra.mxu0 %vm1190_vm1, %v994_v10 }
  0x6a   : > { %933 = vmatmul.mubr.msk.f32.vlgmr.msra.gmra.mrb[0].mxu0 %vm435_vm0, %v408_v5 }
  0x6b   : > { %935 = vmatprep.mubr.msk.f32.mxu0 %vm435_vm0, %v409_v11  ;;  %v770_v11 = vstv %s768_s28 }
  0x6e   : > { %936 = vmatmul.mubr.msk.f32.gmra.mrb[2].mxu0 %vm435_vm0, %v410_v7 }
  0x9e   : > { %v418_v13 = vpop.permute.xlu0 %417 }
  0x9f   : > { %v428_v14 = vpop.permute.xlu1 %427 }
  0xa2   : > { %v423_v15 = vpop.permute.xlu0 %422 }
  0xa3   : > { %v433_v21 = vpop.permute.xlu1 %432 }
  0xa6   : > { %v604_v38 = vpop.permute.xlu0 %603 }
  0xa7   : > { %v609_v39 = vpop.permute.xlu1 %608 }
  0xaa   : > { %v614_v40 = vpop.permute.xlu0 %613 }
  0xab   : > { %v619_v41 = vpop.permute.xlu1 %618 }
  0xae   : > { %v738_v47 = vpop.permute.xlu0 %737 }
  0xaf   : > { %v743_v50 = vpop.permute.xlu1 %742 }
  0xb2   : > { %v748_v61 = vpop.permute.xlu0 %747 }
  0xb3   : > { %v753_v1 = vpop.permute.xlu1 %752 }
 0x13d   : > { %v934_v16 = vpop.f32.mrb[0].mxu0 }
 0x13e   : > { %v568_v17 = vadd.f32 %v934_v16, %v423_v15  ;;  %v562_v18 = vpop.f32.mrb[1].mxu0 }
 0x13f   : > { %v563_v19 = vadd.f32 %v562_v18, %v418_v13 }
 0x140   : > { %v586_v20 = vmul.f32 0.01, %v568_v17  ;;  %vm582_vm3 = vcmp.gt.f32.partialorder %v568_v17, 0.0 }
 0x141   : > { %v585_v22 = vmul.f32 0.01, %v563_v19  ;;  %v937_v23 = vpop.f32.mrb[2].mxu0  ;;  %vm581_vm4 = vcmp.gt.f32.partialorder %v563_v19, 0.0 }
 0x142   : > { %v578_v24 = vadd.f32 %v937_v23, %v433_v21  ;;  %v572_v25 = vpop.f32.mrb[3].mxu0  ;;  %v590_v26 = vsel %vm582_vm3, %v568_v17, %v586_v20 }
 0x143   : > { %v573_v27 = vadd.f32 %v572_v25, %v428_v14  ;;  %v589_v28 = vsel %vm581_vm4, %v563_v19, %v585_v22 }
 0x144   : > { %vm584_vm5 = vcmp.gt.f32.partialorder %v578_v24, 0.0  ;;  %v588_v29 = vmul.f32 0.01, %v578_v24  ;;  %v1000_v30 = vpack.c.bf16 %v590_v26, %v589_v28 }
 0x145   : > { %vm583_vm6 = vcmp.gt.f32.partialorder %v573_v27, 0.0  ;;  %v587_v31 = vmul.f32 0.01, %v573_v27 }
 0x146   : > { %1001 = vmatprep.subr.bf16.mxu1 %v1000_v30  ;;  %v592_v32 = vsel %vm584_vm5, %v578_v24, %v588_v29 }
 0x147   : > { %1003 = vmatpush3.bf16.msra.mxu1 %v1000_v30  ;;  %v591_v33 = vsel %vm583_vm6, %v573_v27, %v587_v31 }
 0x148   : > { %v1004_v34 = vpack.c.bf16 %v592_v32, %v591_v33 }
 0x14a   : > { %1005 = vmatprep.subr.bf16.mxu1 %v1004_v34 }
 0x14b   : > { %1007 = vmatpush3.bf16.msra.mxu1 %v1004_v34 }
 0x14e   : > { %947 = vmatmul.mubr.msk.f32.vlgmr.msra.gmra.mrb[0].mxu1 %vm621_vm2, %v594_v35 }
 0x14f   : > { %949 = vmatprep.mubr.msk.f32.mxu1 %vm621_vm2, %v595_v36 }
 0x152   : > { %950 = vmatmul.mubr.msk.f32.gmra.mrb[2].mxu1 %vm621_vm2, %v596_v37 }
 0x221   : > { %v948_v42 = vpop.f32.mrb[0].mxu1 }
 0x222   : > { %v706_v43 = vadd.f32 %v948_v42, %v609_v39  ;;  %v700_v44 = vpop.f32.mrb[1].mxu1 }
 0x223   : > { %v701_v45 = vadd.f32 %v700_v44, %v604_v38 }
 0x224   : > { %vm720_vm7 = vcmp.gt.f32.partialorder %v706_v43, 0.0  ;;  %v724_v46 = vmul.f32 0.01, %v706_v43 }
 0x225   : > { %vm719_vm8 = vcmp.gt.f32.partialorder %v701_v45, 0.0  ;;  %v723_v48 = vmul.f32 0.01, %v701_v45  ;;  %v951_v49 = vpop.f32.mrb[2].mxu1 }
 0x226   : > { %v728_v51 = vsel %vm720_vm7, %v706_v43, %v724_v46  ;;  %v716_v52 = vadd.f32 %v951_v49, %v619_v41  ;;  %v710_v53 = vpop.f32.mrb[3].mxu1 }
 0x227   : > { %v756_v54 = vmul.f32 %v743_v50, %v728_v51  ;;  %v727_v55 = vsel %vm719_vm8, %v701_v45, %v723_v48  ;;  %v711_v56 = vadd.f32 %v710_v53, %v614_v40 }
 0x228   : > { %v755_v57 = vmul.f32 %v738_v47, %v727_v55  ;;  %vm722_vm9 = vcmp.gt.f32.partialorder %v716_v52, 0.0  ;;  %v726_v58 = vmul.f32 0.01, %v716_v52 }
 0x229   : > { %vm721_vm10 = vcmp.gt.f32.partialorder %v711_v56, 0.0  ;;  %v725_v59 = vmul.f32 0.01, %v711_v56 }
 0x22a   : > { %v759_v60 = vadd.f32 %v756_v54, %v755_v57  ;;  %v730_v62 = vsel %vm722_vm9, %v716_v52, %v726_v58 }
 0x22b   : > { %v729_v63 = vsel %vm721_vm10, %v711_v56, %v725_v59  ;;  %v758_v2 = vmul.f32 %v753_v1, %v730_v62 }
 0x22c   : > { %v757_v0 = vmul.f32 %v748_v61, %v729_v63 }
 0x22e   : > { %v760_v3 = vadd.f32 %v759_v60, %v757_v0 }
 0x230   : > { %v761_v4 = vadd.f32 %v760_v3, %v758_v2 }
 0x232   : > { %v762_v6 = vrot.slane %v761_v4, 4 }
 0x234   : > { %v763_v8 = vadd.f32 %v762_v6, %v761_v4 }
 0x236   : > { %v764_v9 = vrot.slane %v763_v8, 2 }
 0x238   : > { %v765_v10 = vadd.f32 %v764_v9, %v763_v8 }
 0x23a   : > { %v766_v5 = vrot.slane %v765_v10, 1 }
 0x23c   : > { %v767_v7 = vadd.f32 %v766_v5, %v765_v10 }
 0x23e   : > { %v771_v13 = vmul.f32 %v770_v11, %v767_v7 }
 0x240   : > { %v773_v14 = vadd.f32 %v772_v12, %v771_v13 }
 0x242   : > { %774 = vst [vmem:[%s344_s13] sm:$0x1] %v773_v14 }
 0x243 PF: > { %s20_s30 = sadd.s32 1, %s1055_s30  }
 0x244   : > { %p17_p2 = scmp.ge.s32.totalorder %s20_s30, 5  }
 0x246   :  { %19 = sbr.rel (!%p17_p2) target bundleno = 1 (0x1), region = 91 }
 0x24d   :  { %792 = vsyncpa [#allocation3], 1 }
 0x24e   :  { %794 = vsyncpa [#allocation3 + $0x1], 1 }

</bundles_post_ra>
